<compile_context>
chip_gen: v7x
topology: tpu7x:2x2x1
jax: 0.10.0
libtpu: 0.0.40
codegen_flags: <defaults>
</compile_context>

<pallas_src>
import math
import functools

import jax
import jax.numpy as jnp
from jax.experimental import pallas as pl
from jax.experimental.pallas import tpu as pltpu


def _round_up(v, m):
    return ((v + m - 1) // m) * m


def _pad2(a, rows, cols):
    r, c = a.shape
    if r == rows and c == cols:
        return a
    return jnp.pad(a, ((0, rows - r), (0, cols - c)))


def _fused_gcn_kernel(*refs, n_layers, layer_dims, noise_scale, apply_noise):
    """Entire GCN forward in one kernel.

    refs = (adj, x, [noise], w0, b0, ..., w{L-1}, b{L-1}, out)
    Per layer:  y = relu(adj @ (x @ W + b))   (relu skipped on last layer)
    DP Gaussian noise (noise_scale * noise) is added after layer 0, matching
    the PyTorch forward (post-activation).
    """
    adj_ref = refs[0]
    x_ref = refs[1]
    idx = 2
    noise_ref = None
    if apply_noise:
        noise_ref = refs[2]
        idx = 3
    wb_refs = refs[idx:idx + 2 * n_layers]
    o_ref = refs[-1]

    adj_f32 = adj_ref[...]
    adj_bf = adj_f32.astype(jnp.bfloat16)           # MXU operand (bf16)
    # rank-1 bias term for the (adj @ x) @ W ordering: adj @ (1 b) = rowsum(adj) b
    row_sum = jnp.sum(adj_f32, axis=1, keepdims=True)

    h = x_ref[...].astype(jnp.float32)
    for i in range(n_layers):
        w = wb_refs[2 * i][...].astype(jnp.bfloat16)
        b = wb_refs[2 * i + 1][...]                  # f32 bias
        fi, fo = layer_dims[i]
        if fo > fi:
            # Apply adj on the narrower (input-feature) side.
            t = jnp.dot(adj_bf, h.astype(jnp.bfloat16),
                        preferred_element_type=jnp.float32)
            y = jnp.dot(t.astype(jnp.bfloat16), w,
                        preferred_element_type=jnp.float32)
            y = y + row_sum * b
        else:
            t = jnp.dot(h.astype(jnp.bfloat16), w,
                        preferred_element_type=jnp.float32) + b
            y = jnp.dot(adj_bf, t.astype(jnp.bfloat16),
                        preferred_element_type=jnp.float32)
        if i != n_layers - 1:
            y = jnp.maximum(y, 0.0)                  # relu (all but last layer)
        if i == 0 and apply_noise:
            y = y + noise_scale * noise_ref[...]     # DP noise after layer 0
        h = y
    o_ref[...] = h.astype(o_ref.dtype)


def gcn_forward(x, adj, params, noise):
    """GCN.forward: relu on all but last layer; DP noise after first layer."""
    dp_del = 0.05
    dp_eps = 1.0
    noise_scale = 0.1 * math.sqrt(2 * math.log(1.25 / dp_del)) / dp_eps

    N, f_in = x.shape
    n_layers = len(params)
    feat = [f_in] + [w.shape[1] for (w, _) in params]
    feat_p = [_round_up(f, 128) for f in feat]       # lane-dense feature dims

    # Zero-pad features / weights / bias / noise to lane-dense widths.
    x_p = _pad2(x, N, feat_p[0])
    noise_p = _pad2(noise, N, feat_p[1])
    wb_p = []
    for i, (w, b) in enumerate(params):
        wb_p.append(_pad2(w, feat_p[i], feat_p[i + 1]))
        wb_p.append(_pad2(b, 1, feat_p[i + 1]))

    layer_dims = tuple((feat_p[i], feat_p[i + 1]) for i in range(n_layers))
    kernel = functools.partial(
        _fused_gcn_kernel,
        n_layers=n_layers,
        layer_dims=layer_dims,
        noise_scale=float(noise_scale),
        apply_noise=True,
    )

    out_p = pl.pallas_call(
        kernel,
        out_shape=jax.ShapeDtypeStruct((N, feat_p[-1]), jnp.float32),
        compiler_params=pltpu.CompilerParams(
            vmem_limit_bytes=32 * 1024 * 1024),
    )(adj, x_p, noise_p, *wb_p)

    return out_p[:, :feat[-1]]


def init_gcn_params(key, in_features, hidden_features, out_features, n_layers):
    """Deterministic parameter init matching the PyTorch module shapes.

    linear.weight: xavier_normal_ with gain = calculate_gain('relu') = sqrt(2)
    linear.bias:   nn.Linear default U(-1/sqrt(fan_in), 1/sqrt(fan_in))
    """
    if isinstance(hidden_features, int):
        hidden_features = [hidden_features] * (n_layers - 1)
    n_features = [in_features] + list(hidden_features) + [out_features]

    gain = math.sqrt(2.0)
    params = []
    for i in range(n_layers):
        fi, fo = n_features[i], n_features[i + 1]
        key, kw, kb = jax.random.split(key, 3)
        std = gain * math.sqrt(2.0 / (fi + fo))
        w = std * jax.random.normal(kw, (fi, fo), dtype=jnp.float32)
        bound = 1.0 / math.sqrt(fi)
        b = jax.random.uniform(kb, (1, fo), dtype=jnp.float32,
                               minval=-bound, maxval=bound)
        params.append((w, b))
    return params


def make_normalized_adj(key, n):
    """Synthetic GCNAdjNorm-style adjacency: D^-1/2 (A + I) D^-1/2 (dense)."""
    a = (jax.random.uniform(key, (n, n)) > 0.7).astype(jnp.float32)
    a = jnp.maximum(a, a.T)                       # symmetric
    a = a + jnp.eye(n, dtype=jnp.float32)         # self loops
    deg = jnp.sum(a, axis=1)
    d_inv_sqrt = 1.0 / jnp.sqrt(deg)
    return a * d_inv_sqrt[:, None] * d_inv_sqrt[None, :]


def _gcn_reference(x, adj, params, noise, noise_scale):
    """Pure-JAX f32 reference of the module forward (for tolerance check)."""
    n_layers = len(params)
    h = x
    for i, (w, b) in enumerate(params):
        h = h @ w + b
        h = adj @ h
        if i != n_layers - 1:
            h = jnp.maximum(h, 0.0)
        if i == 0:
            h = h + noise_scale * noise
    return h


if __name__ == "__main__":
    key = jax.random.PRNGKey(0)
    k_x, k_adj, k_noise, k_params = jax.random.split(key, 4)

    N = 16                 # number of graph nodes
    in_features = 16
    hidden_features = 32
    out_features = 8
    n_layers = 2

    x = jax.random.normal(k_x, (N, in_features), dtype=jnp.float32)
    adj = make_normalized_adj(k_adj, N)
    params = init_gcn_params(k_params, in_features, hidden_features,
                             out_features, n_layers)
    # torch.normal(0, 1, x.shape) after layer 0 -> shape [N, hidden_features]
    noise = jax.random.normal(k_noise, (N, hidden_features), dtype=jnp.float32)

    out = gcn_forward(x, adj, params, noise)
    out = jax.block_until_ready(out)
    assert out.shape == (N, out_features), out.shape

    # Loose-tolerance check vs. f32 reference (kernel uses bf16 MXU operands).
    noise_scale = 0.1 * math.sqrt(2 * math.log(1.25 / 0.05)) / 1.0
    ref = _gcn_reference(x, adj, params, noise, noise_scale)
    assert bool(jnp.all(jnp.isfinite(out)))
    assert bool(jnp.allclose(out, ref, atol=1e-1, rtol=1e-1)), (
        float(jnp.max(jnp.abs(out - ref))))

    print("KERNEL_OK")
</pallas_src>

<mosaic_0001>
module attributes {stable_mosaic.version = 11 : i64} {
  func.func @_fused_gcn_kernel(%arg0: memref<16x16xf32, #tpu.memory_space<vmem>>, %arg1: memref<16x128xf32, #tpu.memory_space<vmem>>, %arg2: memref<16x128xf32, #tpu.memory_space<vmem>>, %arg3: memref<128x128xf32, #tpu.memory_space<vmem>>, %arg4: memref<1x128xf32, #tpu.memory_space<vmem>>, %arg5: memref<128x128xf32, #tpu.memory_space<vmem>>, %arg6: memref<1x128xf32, #tpu.memory_space<vmem>>, %arg7: memref<16x128xf32, #tpu.memory_space<vmem>>) attributes {dimension_semantics = [], scalar_prefetch = 0 : i64, scratch_operands = 0 : i64, tpu.core_type = #tpu.core_type<tc>} {
    %c0 = arith.constant 0 : index
    %c0_0 = arith.constant 0 : index
    %0 = vector.load %arg0[%c0, %c0_0] : memref<16x16xf32, #tpu.memory_space<vmem>>, vector<16x16xf32>
    %1 = arith.truncf %0 : vector<16x16xf32> to vector<16x16xbf16>
    %c0_1 = arith.constant 0 : index
    %c0_2 = arith.constant 0 : index
    %2 = vector.load %arg1[%c0_1, %c0_2] : memref<16x128xf32, #tpu.memory_space<vmem>>, vector<16x128xf32>
    %c0_3 = arith.constant 0 : index
    %c0_4 = arith.constant 0 : index
    %3 = vector.load %arg3[%c0_3, %c0_4] : memref<128x128xf32, #tpu.memory_space<vmem>>, vector<128x128xf32>
    %4 = arith.truncf %3 : vector<128x128xf32> to vector<128x128xbf16>
    %c0_5 = arith.constant 0 : index
    %c0_6 = arith.constant 0 : index
    %5 = vector.load %arg4[%c0_5, %c0_6] : memref<1x128xf32, #tpu.memory_space<vmem>>, vector<1x128xf32>
    %6 = arith.truncf %2 : vector<16x128xf32> to vector<16x128xbf16>
    %cst = arith.constant dense<0.000000e+00> : vector<16x128xf32>
    %7 = tpu.matmul %6, %4, %cst {dimension_numbers = #tpu.dot_dimension_numbers<[1], [0], [0], [1], [0, 0, 1, 1], [], []>} : vector<16x128xbf16>, vector<128x128xbf16>, vector<16x128xf32> -> vector<16x128xf32>
    %8 = vector.broadcast %5 : vector<1x128xf32> to vector<16x128xf32>
    %9 = arith.addf %7, %8 : vector<16x128xf32>
    %10 = arith.truncf %9 : vector<16x128xf32> to vector<16x128xbf16>
    %cst_7 = arith.constant dense<0.000000e+00> : vector<16x128xf32>
    %11 = tpu.matmul %1, %10, %cst_7 {dimension_numbers = #tpu.dot_dimension_numbers<[1], [0], [0], [1], [0, 0, 1, 1], [], []>} : vector<16x16xbf16>, vector<16x128xbf16>, vector<16x128xf32> -> vector<16x128xf32>
    %cst_8 = arith.constant 0.000000e+00 : f32
    %12 = vector.broadcast %cst_8 : f32 to vector<16x128xf32>
    %13 = arith.maximumf %11, %12 : vector<16x128xf32>
    %c0_9 = arith.constant 0 : index
    %c0_10 = arith.constant 0 : index
    %14 = vector.load %arg2[%c0_9, %c0_10] : memref<16x128xf32, #tpu.memory_space<vmem>>, vector<16x128xf32>
    %cst_11 = arith.constant 0.253727257 : f32
    %15 = vector.broadcast %cst_11 : f32 to vector<16x128xf32>
    %16 = arith.mulf %15, %14 : vector<16x128xf32>
    %17 = arith.addf %13, %16 : vector<16x128xf32>
    %c0_12 = arith.constant 0 : index
    %c0_13 = arith.constant 0 : index
    %18 = vector.load %arg5[%c0_12, %c0_13] : memref<128x128xf32, #tpu.memory_space<vmem>>, vector<128x128xf32>
    %19 = arith.truncf %18 : vector<128x128xf32> to vector<128x128xbf16>
    %c0_14 = arith.constant 0 : index
    %c0_15 = arith.constant 0 : index
    %20 = vector.load %arg6[%c0_14, %c0_15] : memref<1x128xf32, #tpu.memory_space<vmem>>, vector<1x128xf32>
    %21 = arith.truncf %17 : vector<16x128xf32> to vector<16x128xbf16>
    %cst_16 = arith.constant dense<0.000000e+00> : vector<16x128xf32>
    %22 = tpu.matmul %21, %19, %cst_16 {dimension_numbers = #tpu.dot_dimension_numbers<[1], [0], [0], [1], [0, 0, 1, 1], [], []>} : vector<16x128xbf16>, vector<128x128xbf16>, vector<16x128xf32> -> vector<16x128xf32>
    %23 = vector.broadcast %20 : vector<1x128xf32> to vector<16x128xf32>
    %24 = arith.addf %22, %23 : vector<16x128xf32>
    %25 = arith.truncf %24 : vector<16x128xf32> to vector<16x128xbf16>
    %cst_17 = arith.constant dense<0.000000e+00> : vector<16x128xf32>
    %26 = tpu.matmul %1, %25, %cst_17 {dimension_numbers = #tpu.dot_dimension_numbers<[1], [0], [0], [1], [0, 0, 1, 1], [], []>} : vector<16x16xbf16>, vector<16x128xbf16>, vector<16x128xf32> -> vector<16x128xf32>
    %c0_18 = arith.constant 0 : index
    %c0_19 = arith.constant 0 : index
    %27 = vector.load %arg7[%c0_18, %c0_19] : memref<16x128xf32, #tpu.memory_space<vmem>>, vector<16x128xf32>
    tpu.vector_store %arg7[%c0_18, %c0_19], %26 {strides = array<i32>} : memref<16x128xf32, #tpu.memory_space<vmem>>, vector<16x128xf32>,
    return
  }
}

</mosaic_0001>

<bundles_post_ra>
// kernel: tpu_custom_call.1
= control target key start
LH: loop header
LB: loop body
LE: loop exit
PB: predicated region body
PF: predicated region fallthrough
CT: control target
= control target key end

     0   :  { %12 = vsyncpa [#allocation3], 0  ;;  %s784_s0 = inlined_call_operand.hbm [shape: f32[16,16], index: 0, kind: input, shape index: {}]   ;;  %s785_s1 = inlined_call_operand.hbm [shape: f32[16,128], index: 1, kind: input, shape index: {}]   ;;  %s786_s2 = inlined_call_operand.hbm [shape: f32[16,128], index: 2, kind: input, shape index: {}]   ;;  %s787_s3 = inlined_call_operand.hbm [shape: f32[128,128], index: 3, kind: input, shape index: {}]   ;;  %s788_s4 = inlined_call_operand.vmem [shape: f32[1,128], index: 4, kind: input, shape index: {}]   ;;  %s789_s5 = inlined_call_operand.hbm [shape: f32[128,128], index: 5, kind: input, shape index: {}]   ;;  %s790_s6 = inlined_call_operand.vmem [shape: f32[1,128], index: 6, kind: input, shape index: {}]   ;;  %s791_s7 = inlined_call_operand.hbm [shape: f32[16,128], index: 7, kind: output, shape index: {}]  }
   0x1   :  { %13 = vsyncpa [#allocation6], 0 }
   0x2   :  { %14 = vsyncpa [#allocation9], 0 }
   0x3   :  { %15 = vsyncpa [#allocation4], 0  ;;  %s592_s24 = smov [#allocation5]   ;;  %s593_s26 = smov [#allocation8]  }
   0x4   :  { %s33_s25 = sshll.u32 %s592_s24, 4  ;;  %s57_s27 = sshll.u32 %s593_s26, 4  ;;  %s34_s25 = int_to_ptr.vmem [resolvable:$true] %s33_s25  ;;  %s642_s27 = int_to_ptr.vmem [resolvable:$true] %s57_s27 }
   0x5   :  { %s452_s30 = scalar_lea.hbm %s785_s1, 256 }
   0x6   :  { %p453_p0 = scmp.ne.s32.totalorder %s785_s1, %s452_s30  ;;  %p456_p1 = scmp.lt.u32.totalorder %s452_s30, %s785_s1 }
   0x8   :  { %p458_p2 = pnand %p456_p1, %p453_p0 }
   0xa   :  { %461 = shalt.err (!%p458_p2)
}
   0xb   :  { %s462_s12 = scalar_lea.vmem %s34_s25, 256  ;;  %p467_p4 = scmp.lt.s32.totalorder %s34_s25, %s34_s25 }
   0xc   :  { %p463_p3 = scmp.ne.s32.totalorder %s34_s25, %s462_s12  ;;  %p468_p5 = scmp.lt.s32.totalorder %s462_s12, %s462_s12 }
   0xe   :  { %p469_p6 = por %p468_p5, %p467_p4 }
  0x10   :  { %p470_p7 = pnand %p469_p6, %p463_p3 }
  0x12   :  { %473 = shalt.err (!%p470_p7)
}
  0x13   :  { %s594_s13 = smov 128   ;;  %s595_s14 = smov 8  }
  0x14   :  { %39 = dma.hbm_to_vmem [thread:$0]  %s785_s1, 256, %s34_s25, [#allocation6], %s594_s13, %s594_s13, %s595_s14  }
  0x15   :  { %s474_s19 = scalar_lea.hbm %s787_s3, 2048 }
  0x16   :  { %p475_p8 = scmp.ne.s32.totalorder %s787_s3, %s474_s19  ;;  %p478_p9 = scmp.lt.u32.totalorder %s474_s19, %s787_s3 }
  0x18   :  { %p480_p10 = pnand %p478_p9, %p475_p8 }
  0x1a   :  { %483 = shalt.err (!%p480_p10)
}
  0x1b   :  { %s484_s24 = scalar_lea.vmem %s642_s27, 2048  ;;  %p489_p12 = scmp.lt.s32.totalorder %s642_s27, %s642_s27 }
  0x1c   :  { %p485_p11 = scmp.ne.s32.totalorder %s642_s27, %s484_s24  ;;  %p490_p13 = scmp.lt.s32.totalorder %s484_s24, %s484_s24 }
  0x1e   :  { %p491_p0 = por %p490_p13, %p489_p12 }
  0x20   :  { %p492_p1 = pnand %p491_p0, %p485_p11 }
  0x22   :  { %495 = shalt.err (!%p492_p1)
}
  0x23   :  { %63 = dma.hbm_to_vmem [thread:$0]  %s787_s3, 2048, %s642_s27, [#allocation9], %s594_s13, %s594_s13, %s595_s14  }
  0x24   :  { %s596_s26 = smov [#allocation2]   ;;  %s597_s29 = smov [#allocation7]  }
  0x25   :  { %s21_s28 = sshll.u32 %s596_s26, 4  ;;  %s45_s30 = sshll.u32 %s597_s29, 4  ;;  %s22_s28 = int_to_ptr.vmem [resolvable:$true] %s21_s28  ;;  %s679_s30 = int_to_ptr.vmem [resolvable:$true] %s45_s30 }
  0x26   :  { %s496_s10 = scalar_lea.hbm %s784_s0, 256 }
  0x27   :  { %p497_p2 = scmp.ne.s32.totalorder %s784_s0, %s496_s10  ;;  %p500_p3 = scmp.lt.u32.totalorder %s496_s10, %s784_s0 }
  0x29   :  { %p502_p4 = pnand %p500_p3, %p497_p2 }
  0x2b   :  { %505 = shalt.err (!%p502_p4)
}
  0x2c   :  { %s506_s3 = scalar_lea.vmem %s22_s28, 256  ;;  %p511_p6 = scmp.lt.s32.totalorder %s22_s28, %s22_s28 }
  0x2d   :  { %p507_p5 = scmp.ne.s32.totalorder %s22_s28, %s506_s3  ;;  %p512_p7 = scmp.lt.s32.totalorder %s506_s3, %s506_s3 }
  0x2f   :  { %p513_p8 = por %p512_p7, %p511_p6 }
  0x31   :  { %p514_p9 = pnand %p513_p8, %p507_p5 }
  0x33   :  { %517 = shalt.err (!%p514_p9)
}
  0x34   :  { %27 = dma.hbm_to_vmem [thread:$0]  %s784_s0, 256, %s22_s28, [#allocation3], %s594_s13, %s594_s13, %s595_s14  }
  0x35   :  { %s518_s20 = scalar_lea.hbm %s786_s2, 256 }
  0x36   :  { %p519_p10 = scmp.ne.s32.totalorder %s786_s2, %s518_s20  ;;  %p522_p11 = scmp.lt.u32.totalorder %s518_s20, %s786_s2 }
  0x38   :  { %p524_p12 = pnand %p522_p11, %p519_p10 }
  0x3a   :  { %527 = shalt.err (!%p524_p12)
}
  0x3b   :  { %s528_s1 = scalar_lea.vmem %s679_s30, 256  ;;  %p533_p0 = scmp.lt.s32.totalorder %s679_s30, %s679_s30 }
  0x3c   :  { %p529_p13 = scmp.ne.s32.totalorder %s679_s30, %s528_s1  ;;  %p534_p1 = scmp.lt.s32.totalorder %s528_s1, %s528_s1 }
  0x3e   :  { %p535_p2 = por %p534_p1, %p533_p0 }
  0x40   :  { %p536_p3 = pnand %p535_p2, %p529_p13 }
  0x42   :  { %539 = shalt.err (!%p536_p3)
}
  0x43   :  { %51 = dma.hbm_to_vmem [thread:$0]  %s786_s2, 256, %s679_s30, [#allocation6], %s594_s13, %s594_s13, %s595_s14  }
  0x44   :  { %s598_s26 = smov [#allocation10]   ;;  %s540_s9 = scalar_lea.hbm %s789_s5, 2048 }
  0x45   :  { %s71_s28 = sshll.u32 %s598_s26, 4  ;;  %p541_p4 = scmp.ne.s32.totalorder %s789_s5, %s540_s9  ;;  %s72_s28 = int_to_ptr.vmem [resolvable:$true] %s71_s28 }
  0x46   :  { %p544_p5 = scmp.lt.u32.totalorder %s540_s9, %s789_s5 }
  0x48   :  { %p546_p6 = pnand %p544_p5, %p541_p4 }
  0x4a   :  { %549 = shalt.err (!%p546_p6)
}
  0x4b   :  { %s550_s16 = scalar_lea.vmem %s72_s28, 2048  ;;  %p555_p8 = scmp.lt.s32.totalorder %s72_s28, %s72_s28 }
  0x4c   :  { %p551_p7 = scmp.ne.s32.totalorder %s72_s28, %s550_s16  ;;  %p556_p9 = scmp.lt.s32.totalorder %s550_s16, %s550_s16 }
  0x4e   :  { %p557_p10 = por %p556_p9, %p555_p8 }
  0x50   :  { %p558_p11 = pnand %p557_p10, %p551_p7 }
  0x52   :  { %561 = shalt.err (!%p558_p11)
}
  0x53   :  { %77 = dma.hbm_to_vmem [thread:$0]  %s789_s5, 2048, %s72_s28, [#allocation9], %s594_s13, %s594_s13, %s595_s14  }
  0x54   :  { %584 = dma.done.wait [#allocation3], 256  }
  0x55   :  { %585 = vsyncadd [#allocation3], 4294967040 }
  0x56   :  { %586 = dma.done.wait [#allocation6], 512  }
  0x57   :  { %587 = vsyncadd [#allocation6], 4294966784 }
  0x58   :  { %588 = dma.done.wait [#allocation9], 4096  }
  0x59   :  { %589 = vsyncadd [#allocation9], 4294963200  ;;  %v599_v0 = vmov 0.0   ;;  %vm600_vm0 = vmmov 0   ;;  %v101_v1 = vld [vmem:[#allocation8] sm:$0xff]  ;;  %v102_v2 = vld [vmem:[#allocation8 + $0x8] sm:$0xff] }
  0x5a   :  { %390 = vmatprep.subr.bf16.mxu0 %v599_v0  ;;  %406 = vmatprep.mubr.msk.bf16.mxu0 %vm600_vm0, %v599_v0  ;;  %v103_v3 = vld [vmem:[#allocation8 + $0x10] sm:$0xff]  ;;  %v117_v4 = vpack.c.bf16 %v102_v2, %v101_v1  ;;  %v104_v5 = vld [vmem:[#allocation8 + $0x18] sm:$0xff]  ;;  %v105_v7 = vld [vmem:[#allocation8 + $0x20] sm:$0xff]  ;;  %vm175_vm1 = vcmask 130048   ;;  %s601_s17 = smov [#allocation11]  }
  0x5b   :  { %410 = vmatprep.subr.bf16.mxu1 %v599_v0  ;;  %412 = vmatprep.mubr.msk.bf16.mxu1 %vm600_vm0, %v599_v0  ;;  %v118_v6 = vpack.c.bf16 %v104_v5, %v103_v3  ;;  %v106_v8 = vld [vmem:[#allocation8 + $0x28] sm:$0xff]  ;;  %v107_v10 = vld [vmem:[#allocation8 + $0x30] sm:$0xff]  ;;  %v108_v11 = vld [vmem:[#allocation8 + $0x38] sm:$0xff]  ;;  %s350_s18 = sshll.u32 %s601_s17, 4  ;;  %s351_s18 = int_to_ptr.vmem [resolvable:$true] %s350_s18 }
  0x5c   :  { %391 = vmatpush3.bf16.msra.mxu0 %v117_v4  ;;  %v119_v9 = vpack.c.bf16 %v106_v8, %v105_v7  ;;  %v120_v12 = vpack.c.bf16 %v108_v11, %v107_v10  ;;  %v109_v13 = vld [vmem:[#allocation8 + $0x40] sm:$0xff]  ;;  %v110_v14 = vld [vmem:[#allocation8 + $0x48] sm:$0xff]  ;;  %v111_v16 = vld [vmem:[#allocation8 + $0x50] sm:$0xff]  ;;  %p567_p13 = scmp.lt.s32.totalorder %s351_s18, %s351_s18 }
  0x5d   :  { %392 = vmatprep.subr.bf16.mxu0 %v599_v0  ;;  %v121_v15 = vpack.c.bf16 %v110_v14, %v109_v13  ;;  %v112_v17 = vld [vmem:[#allocation8 + $0x58] sm:$0xff]  ;;  %v113_v19 = vld [vmem:[#allocation8 + $0x60] sm:$0xff]  ;;  %v114_v20 = vld [vmem:[#allocation8 + $0x68] sm:$0xff] }
  0x5e   :  { %v122_v18 = vpack.c.bf16 %v112_v17, %v111_v16  ;;  %v123_v21 = vpack.c.bf16 %v114_v20, %v113_v19  ;;  %v115_v22 = vld [vmem:[#allocation8 + $0x70] sm:$0xff]  ;;  %v116_v23 = vld [vmem:[#allocation8 + $0x78] sm:$0xff]  ;;  %v99_v25 = vld [vmem:[#allocation5] sm:$0xff] }
  0x5f   :  { %v124_v24 = vpack.c.bf16 %v116_v23, %v115_v22  ;;  %v100_v26 = vld [vmem:[#allocation5 + $0x8] sm:$0xff]  ;;  %v364_v28 = vld [vmem:[%s788_s4] ss:$0 sm:$0xff]  ;;  %v97_v36 = vld [vmem:[#allocation2 + $0x8] sm:$0xff] }
  0x60   :  { %393 = vmatpush3.bf16.msra.mxu0 %v118_v6  ;;  %v126_v27 = vpack.c.bf16 %v100_v26, %v99_v25  ;;  %v96_v35 = vld [vmem:[#allocation2] sm:$0xff]  ;;  %v228_v37 = vld [vmem:[#allocation10] sm:$0xff]  ;;  %v229_v38 = vld [vmem:[#allocation10 + $0x8] sm:$0xff] }
  0x61   :  { %394 = vmatprep.subr.bf16.mxu0 %v599_v0  ;;  %v750_v40 = vpack.c.bf16 %v97_v36, %v96_v35  ;;  %v244_v41 = vpack.c.bf16 %v229_v38, %v228_v37  ;;  %v230_v42 = vld [vmem:[#allocation10 + $0x10] sm:$0xff]  ;;  %v231_v43 = vld [vmem:[#allocation10 + $0x18] sm:$0xff]  ;;  %v232_v45 = vld [vmem:[#allocation10 + $0x20] sm:$0xff] }
  0x62   :  { %v245_v44 = vpack.c.bf16 %v231_v43, %v230_v42  ;;  %v233_v46 = vld [vmem:[#allocation10 + $0x28] sm:$0xff]  ;;  %v234_v48 = vld [vmem:[#allocation10 + $0x30] sm:$0xff]  ;;  %v235_v49 = vld [vmem:[#allocation10 + $0x38] sm:$0xff] }
  0x63   :  { %v246_v47 = vpack.c.bf16 %v233_v46, %v232_v45  ;;  %v247_v50 = vpack.c.bf16 %v235_v49, %v234_v48  ;;  %v236_v51 = vld [vmem:[#allocation10 + $0x40] sm:$0xff]  ;;  %v237_v52 = vld [vmem:[#allocation10 + $0x48] sm:$0xff]  ;;  %v238_v54 = vld [vmem:[#allocation10 + $0x50] sm:$0xff] }
  0x64   :  { %395 = vmatpush3.bf16.msra.mxu0 %v119_v9  ;;  %v248_v53 = vpack.c.bf16 %v237_v52, %v236_v51  ;;  %v239_v55 = vld [vmem:[#allocation10 + $0x58] sm:$0xff]  ;;  %v240_v57 = vld [vmem:[#allocation10 + $0x60] sm:$0xff]  ;;  %v241_v58 = vld [vmem:[#allocation10 + $0x68] sm:$0xff] }
  0x65   :  { %396 = vmatprep.subr.bf16.mxu0 %v599_v0  ;;  %v249_v56 = vpack.c.bf16 %v239_v55, %v238_v54  ;;  %v250_v59 = vpack.c.bf16 %v241_v58, %v240_v57  ;;  %v242_v60 = vld [vmem:[#allocation10 + $0x70] sm:$0xff]  ;;  %v243_v61 = vld [vmem:[#allocation10 + $0x78] sm:$0xff] }
  0x66   :  { %v251_v62 = vpack.c.bf16 %v243_v61, %v242_v60  ;;  %v222_v63 = vld [vmem:[#allocation7] sm:$0xff]  ;;  %v223_v1 = vld [vmem:[#allocation7 + $0x8] sm:$0xff] }
  0x67   :  { %v224_v4 = vmul.f32 0.25372726, %v222_v63  ;;  %v225_v6 = vmul.f32 0.25372726, %v223_v1 }
  0x68   :  { %397 = vmatpush3.bf16.msra.mxu0 %v120_v12 }
  0x69   :  { %398 = vmatprep.subr.bf16.mxu0 %v599_v0 }
  0x6c   :  { %399 = vmatpush3.bf16.msra.mxu0 %v121_v15 }
  0x6d   :  { %400 = vmatprep.subr.bf16.mxu0 %v599_v0 }
  0x70   :  { %401 = vmatpush3.bf16.msra.mxu0 %v122_v18 }
  0x71   :  { %402 = vmatprep.subr.bf16.mxu0 %v599_v0 }
  0x74   :  { %403 = vmatpush3.bf16.msra.mxu0 %v123_v21 }
  0x75   :  { %404 = vmatprep.subr.bf16.mxu0 %v599_v0 }
  0x78   :  { %405 = vmatpush3.bf16.msra.mxu0 %v124_v24 }
  0x79   :  { %436 = vmatprep.subr.bf16.mxu0 %v599_v0 }
  0x7b   :  { %407 = vmatmul.mubr.bf16.vlgmr.msra.gmra.mrb[0].mxu0 %v126_v27 }
  0x7c   :  { %438 = vmatprep.mubr.msk.bf16.mxu0 %vm600_vm0, %v599_v0 }
 0x14e   :  { %v167_v29 = vpop.f32.mrb[0].mxu0 }
 0x14f   :  { %v408_v30 = vpop.f32.mrb[1].mxu0  ;;  %v168_v32 = vadd.f32 %v364_v28, %v167_v29 }
 0x150   :  { %v170_v31 = vpop.f32.mrb[2].mxu0 }
 0x151   :  { %v171_v33 = vadd.f32 %v364_v28, %v170_v31  ;;  %v409_v34 = vpop.f32.mrb[3].mxu0 }
 0x153   :  { %v174_v39 = vpack.c.bf16 %v171_v33, %v168_v32 }
 0x155   :  { %411 = vmatpush3.bf16.msra.mxu1 %v174_v39 }
 0x156   :  { %416 = vmatprep.subr.bf16.mxu1 %v599_v0 }
 0x158   :  { %413 = vmatmul.mubr.msk.bf16.vlgmr.msra.gmra.mrb[0].mxu1 %vm175_vm1, %v750_v40 }
 0x159   :  { %417 = vmatpush3.bf16.msra.mxu1 %v244_v41  ;;  %432 = vmatprep.mubr.msk.bf16.mxu1 %vm600_vm0, %v599_v0 }
 0x15a   :  { %418 = vmatprep.subr.bf16.mxu1 %v599_v0 }
 0x15d   :  { %419 = vmatpush3.bf16.msra.mxu1 %v245_v44 }
 0x15e   :  { %420 = vmatprep.subr.bf16.mxu1 %v599_v0 }
 0x161   :  { %421 = vmatpush3.bf16.msra.mxu1 %v246_v47 }
 0x162   :  { %422 = vmatprep.subr.bf16.mxu1 %v599_v0 }
 0x165   :  { %423 = vmatpush3.bf16.msra.mxu1 %v247_v50 }
 0x166   :  { %424 = vmatprep.subr.bf16.mxu1 %v599_v0 }
 0x169   :  { %425 = vmatpush3.bf16.msra.mxu1 %v248_v53 }
 0x16a   :  { %426 = vmatprep.subr.bf16.mxu1 %v599_v0 }
 0x16d   :  { %427 = vmatpush3.bf16.msra.mxu1 %v249_v56 }
 0x16e   :  { %428 = vmatprep.subr.bf16.mxu1 %v599_v0 }
 0x171   :  { %429 = vmatpush3.bf16.msra.mxu1 %v250_v59 }
 0x172   :  { %430 = vmatprep.subr.bf16.mxu1 %v599_v0  ;;  %v366_v0 = vld [vmem:[%s790_s6] ss:$0 sm:$0xff]  ;;  %s562_s6 = scalar_lea.vmem %s351_s18, 256 }
 0x173   :  { %p563_p12 = scmp.ne.s32.totalorder %s351_s18, %s562_s6  ;;  %p568_p0 = scmp.lt.s32.totalorder %s562_s6, %s562_s6 }
 0x175   :  { %431 = vmatpush3.bf16.msra.mxu1 %v251_v62  ;;  %p569_p1 = por %p568_p0, %p567_p13 }
 0x177   :  { %p570_p2 = pnand %p569_p1, %p563_p12 }
 0x22b   :  { %v213_v2 = vpop.f32.mrb[0].mxu1 }
 0x22c   :  { %v220_v3 = vmax.f32 %v213_v2, 0.0  ;;  %v414_v5 = vpop.f32.mrb[1].mxu1 }
 0x22d   :  { %v216_v7 = vpop.f32.mrb[2].mxu1 }
 0x22e   :  { %v221_v8 = vmax.f32 %v216_v7, 0.0  ;;  %v415_v9 = vpop.f32.mrb[3].mxu1  ;;  %v226_v10 = vadd.f32 %v224_v4, %v220_v3 }
 0x230   :  { %v227_v11 = vadd.f32 %v225_v6, %v221_v8 }
 0x232   :  { %v253_v12 = vpack.c.bf16 %v227_v11, %v226_v10 }
 0x234   :  { %433 = vmatmul.mubr.bf16.vlgmr.msra.gmra.mrb[4].mxu1 %v253_v12 }
 0x307   :  { %v294_v13 = vpop.f32.mrb[4].mxu1 }
 0x308   :  { %v434_v14 = vpop.f32.mrb[5].mxu1  ;;  %v295_v16 = vadd.f32 %v366_v0, %v294_v13 }
 0x309   :  { %v297_v15 = vpop.f32.mrb[6].mxu1 }
 0x30a   :  { %v298_v17 = vadd.f32 %v366_v0, %v297_v15  ;;  %v435_v18 = vpop.f32.mrb[7].mxu1 }
 0x30c   :  { %v301_v19 = vpack.c.bf16 %v298_v17, %v295_v16 }
 0x30e   :  { %437 = vmatpush3.bf16.msra.mxu0 %v301_v19 }
 0x311   :  { %439 = vmatmul.mubr.msk.bf16.vlgmr.msra.gmra.mrb[4].mxu0 %vm175_vm1, %v750_v40 }
 0x3e4   :  { %v336_v20 = vpop.f32.mrb[4].mxu0 }
 0x3e5   :  { %343 = vst [vmem:[#allocation11] sm:$0xff] %v336_v20  ;;  %v440_v21 = vpop.f32.mrb[5].mxu0 }
 0x3e6   :  { %v339_v22 = vpop.f32.mrb[6].mxu0 }
 0x3e7   :  { %344 = vst [vmem:[#allocation11 + $0x8] sm:$0xff] %v339_v22  ;;  %v441_v23 = vpop.f32.mrb[7].mxu0 }
 0x3e8   :  { %573 = shalt.err (!%p570_p2)
}
 0x3e9   :  { %s574_s21 = scalar_lea.hbm %s791_s7, 256 }
 0x3ea   :  { %p575_p3 = scmp.ne.s32.totalorder %s791_s7, %s574_s21  ;;  %p578_p4 = scmp.lt.u32.totalorder %s574_s21, %s791_s7 }
 0x3ec   :  { %p580_p5 = pnand %p578_p4, %p575_p3 }
 0x3ee   :  { %583 = shalt.err (!%p580_p5)
}
 0x3ef   :  { %356 = dma.vmem_to_hbm [thread:$0]  %s351_s18, 256, %s791_s7, [#allocation4], %s594_s13, %s594_s13, %s595_s14  }
 0x3f0   :  { %590 = dma.done.wait [#allocation4], 256  }
 0x3f1   :  { %591 = vsyncadd [#allocation4], 4294967040 }
 0x3f2   :  { %360 = vsyncpa [#allocation3], 1 }
 0x3f3   :  { %361 = vsyncpa [#allocation6], 1 }
 0x3f4   :  { %362 = vsyncpa [#allocation9], 1 }
 0x3f5   :  { %363 = vsyncpa [#allocation4], 1 }

</bundles_post_ra>
